<compile_context>
chip_gen: v5e
topology: v5e:2x2
jax: 0.10.0
libtpu: 0.0.40
codegen_flags: <defaults>
</compile_context>

<pallas_src>
import jax
import jax.numpy as jnp
from jax.experimental import pallas as pl
from jax.experimental.pallas import tpu as pltpu

EPS = 1e-5


def _vmem_capacity_bytes():
    try:
        info = pltpu.get_tpu_info()
        cap = getattr(info, "vmem_capacity_bytes", None)
        if cap:
            return int(cap)
    except Exception:
        pass
    return 64 * 1024 * 1024  # conservative: v7x per-TensorCore VMEM


_VMEM_CAP = _vmem_capacity_bytes()
if _VMEM_CAP >= 100 * 1024 * 1024:
    # v5e / v6e: 128 MiB VMEM, single TensorCore -> large resident window wins
    # (cuts HBM traffic ~33% vs the two-pass tiled path).
    _RESIDENT_VMEM_BUDGET = 96 * 1024 * 1024
    _RESIDENT_VMEM_LIMIT = 112 * 1024 * 1024
    _TILED_VMEM_LIMIT = 64 * 1024 * 1024
else:
    # v7x: 64 MiB per-TC VMEM and 2 TensorCores -> keep the (single-core)
    # resident path for small activations only; bigger ones go to the tiled
    # path whose "parallel" grid uses both cores.
    _RESIDENT_VMEM_BUDGET = 20 * 1024 * 1024
    _RESIDENT_VMEM_LIMIT = 40 * 1024 * 1024
    _TILED_VMEM_LIMIT = 40 * 1024 * 1024


# ----------------------------------------------------------------------------
# Kernels
# ----------------------------------------------------------------------------
def _bn_resident_kernel(x_ref, gamma_ref, beta_ref, o_ref):
    """Whole activation resident in VMEM: 1 HBM read + 1 HBM write."""
    xf = x_ref[...].astype(jnp.float32)                 # (N, C, HW)
    n, _, hw = xf.shape
    inv_cnt = 1.0 / float(n * hw)
    # Reduce batch axis first (cheap VPU adds), then lane-reduce H*W (XLU).
    s = jnp.sum(jnp.sum(xf, axis=0), axis=-1, keepdims=True)         # (C, 1)
    ss = jnp.sum(jnp.sum(xf * xf, axis=0), axis=-1, keepdims=True)   # (C, 1)
    mean = s * inv_cnt
    var = jnp.maximum(ss * inv_cnt - mean * mean, 0.0)               # biased
    inv = jax.lax.rsqrt(var + EPS)
    scale = gamma_ref[...] * inv                                      # (C, 1)
    shift = beta_ref[...] - mean * scale                              # (C, 1)
    o_ref[...] = (xf * scale + shift).astype(o_ref.dtype)


def _bn_stats_kernel(x_ref, sum_ref, ssq_ref):
    """Pass 1: per-batch-block channel partial sums / sums of squares.

    Lane-dense accumulation: (C, 128) f32 partials built with VPU adds over
    static 128-lane slices.  Grid axis 0 (batch blocks) is "parallel": each
    block owns its own output slab, so sharding it across TensorCores is
    race-free.  Only grid axis 1 (hw tiles, "arbitrary") revisits the output.
    """
    @pl.when(pl.program_id(1) == 0)
    def _():
        sum_ref[...] = jnp.zeros_like(sum_ref)
        ssq_ref[...] = jnp.zeros_like(ssq_ref)

    x = x_ref[...].astype(jnp.float32)                   # (n_blk, C, hw_tile)
    hw_tile = x.shape[-1]
    s = jnp.zeros(sum_ref.shape[1:], jnp.float32)        # (C, 128)
    ss = jnp.zeros(ssq_ref.shape[1:], jnp.float32)       # (C, 128)
    for i in range(hw_tile // 128):                      # static, lane-aligned
        chunk = x[:, :, i * 128:(i + 1) * 128]           # (n_blk, C, 128)
        s = s + jnp.sum(chunk, axis=0)
        ss = ss + jnp.sum(chunk * chunk, axis=0)
    sum_ref[0] += s
    ssq_ref[0] += ss


def _bn_apply_kernel(x_ref, scale_ref, shift_ref, o_ref):
    """Pass 2: y = x * scale + shift (per-channel scale/shift precomputed)."""
    x = x_ref[...].astype(jnp.float32)                   # (n_blk, C, hw_tile)
    o_ref[...] = (x * scale_ref[...] + shift_ref[...]).astype(o_ref.dtype)


# ----------------------------------------------------------------------------
# Wrappers
# ----------------------------------------------------------------------------
def _choose_tiles(N, C, HW, itemsize, target_bytes=2 * 1024 * 1024,
                  max_hw_tile=4096):
    """Pick (n_blk, hw_tile) for the tiled path.  HW must be 128-aligned.

    hw_tile: largest 128-multiple divisor of HW such that one (C, hw_tile)
    slab stays near the ~2 MiB HBM-roofline sweet spot and the static unroll
    of the lane-dense stats accumulation stays bounded (<= max_hw_tile).
    When the whole spatial extent fits in one tile, several batch samples are
    blocked together (n_blk) to keep per-grid-step DMAs large.
    """
    cap = (target_bytes // max(1, C * itemsize)) // 128 * 128
    cap = int(min(max(cap, 128), max_hw_tile, HW))
    hw_tile = 128
    t = 128
    while t <= cap:
        if HW % t == 0:
            hw_tile = t
        t += 128
    n_blk = 1
    if hw_tile == HW and N > 1:
        blk_bytes = C * HW * itemsize
        max_nb = max(1, int(target_bytes // max(1, blk_bytes)))
        for nb in range(min(N, max_nb), 0, -1):
            if N % nb == 0:
                n_blk = nb
                break
    return n_blk, hw_tile


def _bn_resident(x3, gamma_c1, beta_c1):
    N, C, HW = x3.shape
    return pl.pallas_call(
        _bn_resident_kernel,
        out_shape=jax.ShapeDtypeStruct((N, C, HW), x3.dtype),
        in_specs=[
            pl.BlockSpec((N, C, HW), lambda: (0, 0, 0)),
            pl.BlockSpec((C, 1), lambda: (0, 0)),
            pl.BlockSpec((C, 1), lambda: (0, 0)),
        ],
        out_specs=pl.BlockSpec((N, C, HW), lambda: (0, 0, 0)),
        compiler_params=pltpu.CompilerParams(
            vmem_limit_bytes=_RESIDENT_VMEM_LIMIT),
    )(x3, gamma_c1, beta_c1)


def _bn_tiled(x3, gamma_c1, beta_c1, count, hw_tile=None):
    """Two-pass tiled BN.  x3 is (N, C, HW) with HW a multiple of 128."""
    N, C, HW = x3.shape
    itemsize = x3.dtype.itemsize
    if hw_tile is None:
        n_blk, hw_tile = _choose_tiles(N, C, HW, itemsize)
    else:
        assert HW % hw_tile == 0, "hw_tile must divide (padded) H*W"
        assert hw_tile % 128 == 0, "hw_tile must be lane-aligned"
        n_blk = 1
    n_t = HW // hw_tile
    n_b = N // n_blk

    # Pass 1: per-batch-block moments (reads x from HBM exactly once).
    sum_p, ssq_p = pl.pallas_call(
        _bn_stats_kernel,
        out_shape=(
            jax.ShapeDtypeStruct((n_b, C, 128), jnp.float32),
            jax.ShapeDtypeStruct((n_b, C, 128), jnp.float32),
        ),
        grid=(n_b, n_t),
        in_specs=[pl.BlockSpec((n_blk, C, hw_tile), lambda n, t: (n, 0, t))],
        out_specs=(
            pl.BlockSpec((1, C, 128), lambda n, t: (n, 0, 0)),
            pl.BlockSpec((1, C, 128), lambda n, t: (n, 0, 0)),
        ),
        compiler_params=pltpu.CompilerParams(
            dimension_semantics=("parallel", "arbitrary"),
            vmem_limit_bytes=_TILED_VMEM_LIMIT),
    )(x3)

    # Tiny O(C) finalize in plain JAX: combine partials, biased variance,
    # fused per-channel scale/shift.
    inv_cnt = 1.0 / float(count)
    sum_c = jnp.sum(sum_p, axis=(0, 2)).reshape(C, 1)
    ssq_c = jnp.sum(ssq_p, axis=(0, 2)).reshape(C, 1)
    mean = sum_c * inv_cnt
    var = jnp.maximum(ssq_c * inv_cnt - mean * mean, 0.0)
    inv = jax.lax.rsqrt(var + EPS)
    scale = gamma_c1 * inv                               # (C, 1)
    shift = beta_c1 - mean * scale                       # (C, 1)

    # Pass 2: elementwise normalize; fully parallel grid (uses both TCs on v7x).
    y3 = pl.pallas_call(
        _bn_apply_kernel,
        out_shape=jax.ShapeDtypeStruct((N, C, HW), x3.dtype),
        grid=(n_b, n_t),
        in_specs=[
            pl.BlockSpec((n_blk, C, hw_tile), lambda n, t: (n, 0, t)),
            pl.BlockSpec((C, 1), lambda n, t: (0, 0)),
            pl.BlockSpec((C, 1), lambda n, t: (0, 0)),
        ],
        out_specs=pl.BlockSpec((n_blk, C, hw_tile), lambda n, t: (n, 0, t)),
        compiler_params=pltpu.CompilerParams(
            dimension_semantics=("parallel", "parallel"),
            vmem_limit_bytes=_TILED_VMEM_LIMIT),
    )(x3, scale, shift)
    return y3


def batchnorm2d_pallas(x_nchw, gamma, beta, *, force_tiled=False, hw_tile=None):
    """Training-mode BatchNorm2d forward (batch stats), NCHW in / NCHW out."""
    N, C, H, W = x_nchw.shape
    HW = H * W
    x3 = x_nchw.reshape(N, C, HW)                 # free view, no data movement
    gamma_c1 = gamma.reshape(C, 1).astype(jnp.float32)
    beta_c1 = beta.reshape(C, 1).astype(jnp.float32)

    # Resident fast path: 1 HBM read + 1 HBM write.  Estimate counts the
    # in/out buffers plus ~3 live f32 temporaries per element inside the
    # kernel (widened x, its square during the reduce, pre-cast result).
    est_vmem = x3.size * (2 * x3.dtype.itemsize + 12)
    if (not force_tiled) and est_vmem <= _RESIDENT_VMEM_BUDGET:
        y3 = _bn_resident(x3, gamma_c1, beta_c1)
        return y3.reshape(N, C, H, W)

    # Tiled two-pass path.  Pad H*W up to a multiple of 128 so every load /
    # store is lane-dense; zero padding contributes nothing to the sums and
    # the true element count is used for the mean / variance.
    HW_pad = ((HW + 127) // 128) * 128
    x3p = x3 if HW_pad == HW else jnp.pad(
        x3, ((0, 0), (0, 0), (0, HW_pad - HW)))
    y3p = _bn_tiled(x3p, gamma_c1, beta_c1, count=N * HW, hw_tile=hw_tile)
    y3 = y3p if HW_pad == HW else y3p[:, :, :HW]
    return y3.reshape(N, C, H, W)


class SwitchableBatchNorm2dPallas:
    """JAX/Pallas port of SwitchableBatchNorm2d (training-mode BN forward)."""

    def __init__(self, num_features):
        self.num_features = num_features

    def make_list(self, pruning_rate_list, key):
        self.pruning_rate_list = list(pruning_rate_list)
        self.params = []
        for i, _ in enumerate(self.pruning_rate_list):
            kg, kb = jax.random.split(jax.random.fold_in(key, i))
            # PyTorch default init is gamma=1, beta=0; small random offsets
            # make the BN selection observable in the test.
            gamma = 1.0 + 0.1 * jax.random.normal(
                kg, (self.num_features,), jnp.float32)
            beta = 0.1 * jax.random.normal(kb, (self.num_features,), jnp.float32)
            self.params.append((gamma, beta))
        self.pruning_rate = max(self.pruning_rate_list)

    def __call__(self, x_nchw):
        idx = self.pruning_rate_list.index(self.pruning_rate)
        gamma, beta = self.params[idx]
        return batchnorm2d_pallas(x_nchw, gamma, beta)


def _bn_reference(x, gamma, beta):
    C = x.shape[1]
    mean = jnp.mean(x, axis=(0, 2, 3), keepdims=True)
    var = jnp.mean((x - mean) ** 2, axis=(0, 2, 3), keepdims=True)
    return ((x - mean) / jnp.sqrt(var + EPS) * gamma.reshape(1, C, 1, 1)
            + beta.reshape(1, C, 1, 1))


if __name__ == "__main__":
    key = jax.random.PRNGKey(0)
    kx, kp, kx2, kx3 = jax.random.split(key, 4)

    # Small NCHW activation (exercises the VMEM-resident fast path).
    N, C, H, W = 2, 4, 16, 16
    x = jax.random.normal(kx, (N, C, H, W), jnp.float32) * 2.0 + 0.5

    mod = SwitchableBatchNorm2dPallas(num_features=C)
    mod.make_list([0.25, 0.5, 0.75], kp)

    y = jax.block_until_ready(mod(x))
    assert y.shape == (N, C, H, W)

    idx = mod.pruning_rate_list.index(mod.pruning_rate)
    gamma, beta = mod.params[idx]
    y_ref = _bn_reference(x, gamma, beta)
    err = float(jnp.max(jnp.abs(y - y_ref)))
    assert err < 5e-4, f"resident-path mismatch: {err}"

    # Tiled two-pass path with an explicit hw_tile (cross-tile stats
    # accumulation + lane-dense apply).
    x2 = jax.random.normal(kx2, (2, 4, 32, 32), jnp.float32) - 1.5
    y2 = jax.block_until_ready(
        batchnorm2d_pallas(x2, gamma, beta, force_tiled=True, hw_tile=128))
    y2_ref = _bn_reference(x2, gamma, beta)
    err2 = float(jnp.max(jnp.abs(y2 - y2_ref)))
    assert err2 < 5e-4, f"tiled-path mismatch: {err2}"

    # Tiled path with auto tile choice, batch blocking and non-128 H*W
    # (14*14 = 196 -> padded to 256; pad masked out of the statistics).
    x3 = jax.random.normal(kx3, (2, 4, 14, 14), jnp.float32) * 1.7 + 0.3
    y3 = jax.block_until_ready(
        batchnorm2d_pallas(x3, gamma, beta, force_tiled=True))
    y3_ref = _bn_reference(x3, gamma, beta)
    err3 = float(jnp.max(jnp.abs(y3 - y3_ref)))
    assert err3 < 5e-4, f"padded-tiled-path mismatch: {err3}"

    print("KERNEL_OK")
</pallas_src>

<mosaic_0001>
module attributes {stable_mosaic.version = 11 : i64} {
  func.func @_bn_resident_kernel(%arg0: memref<2x4x256xf32, #tpu.memory_space<vmem>>, %arg1: memref<4x1xf32, #tpu.memory_space<vmem>>, %arg2: memref<4x1xf32, #tpu.memory_space<vmem>>, %arg3: memref<2x4x256xf32, #tpu.memory_space<vmem>>) attributes {dimension_semantics = [], scalar_prefetch = 0 : i64, scratch_operands = 0 : i64, tpu.core_type = #tpu.core_type<tc>} {
    %c0 = arith.constant 0 : index
    %c0_0 = arith.constant 0 : index
    %c0_1 = arith.constant 0 : index
    %0 = vector.load %arg0[%c0, %c0_0, %c0_1] : memref<2x4x256xf32, #tpu.memory_space<vmem>>, vector<2x4x256xf32>
    %cst = arith.constant dense<0.000000e+00> : vector<4x256xf32>
    %1 = vector.multi_reduction <add>, %0, %cst [0] : vector<2x4x256xf32> to vector<4x256xf32>
    %cst_2 = arith.constant dense<0.000000e+00> : vector<4xf32>
    %2 = vector.multi_reduction <add>, %1, %cst_2 [1] : vector<4x256xf32> to vector<4xf32>
    %3 = vector.shape_cast %2 : vector<4xf32> to vector<4x1xf32>
    %4 = arith.mulf %0, %0 : vector<2x4x256xf32>
    %cst_3 = arith.constant dense<0.000000e+00> : vector<4x256xf32>
    %5 = vector.multi_reduction <add>, %4, %cst_3 [0] : vector<2x4x256xf32> to vector<4x256xf32>
    %cst_4 = arith.constant dense<0.000000e+00> : vector<4xf32>
    %6 = vector.multi_reduction <add>, %5, %cst_4 [1] : vector<4x256xf32> to vector<4xf32>
    %7 = vector.shape_cast %6 : vector<4xf32> to vector<4x1xf32>
    %cst_5 = arith.constant 0.001953125 : f32
    %8 = vector.broadcast %cst_5 : f32 to vector<4x1xf32>
    %9 = arith.mulf %3, %8 : vector<4x1xf32>
    %cst_6 = arith.constant 0.001953125 : f32
    %10 = vector.broadcast %cst_6 : f32 to vector<4x1xf32>
    %11 = arith.mulf %7, %10 : vector<4x1xf32>
    %12 = arith.mulf %9, %9 : vector<4x1xf32>
    %13 = arith.subf %11, %12 : vector<4x1xf32>
    %cst_7 = arith.constant 0.000000e+00 : f32
    %14 = vector.broadcast %cst_7 : f32 to vector<4x1xf32>
    %15 = arith.maximumf %13, %14 : vector<4x1xf32>
    %cst_8 = arith.constant 9.99999974E-6 : f32
    %16 = vector.broadcast %cst_8 : f32 to vector<4x1xf32>
    %17 = arith.addf %15, %16 : vector<4x1xf32>
    %18 = math.rsqrt %17 : vector<4x1xf32>
    %c0_9 = arith.constant 0 : index
    %c0_10 = arith.constant 0 : index
    %19 = vector.load %arg1[%c0_9, %c0_10] : memref<4x1xf32, #tpu.memory_space<vmem>>, vector<4x1xf32>
    %20 = arith.mulf %19, %18 : vector<4x1xf32>
    %c0_11 = arith.constant 0 : index
    %c0_12 = arith.constant 0 : index
    %21 = vector.load %arg2[%c0_11, %c0_12] : memref<4x1xf32, #tpu.memory_space<vmem>>, vector<4x1xf32>
    %22 = arith.mulf %9, %20 : vector<4x1xf32>
    %23 = arith.subf %21, %22 : vector<4x1xf32>
    %24 = vector.shape_cast %20 : vector<4x1xf32> to vector<1x4x1xf32>
    %25 = vector.broadcast %24 : vector<1x4x1xf32> to vector<2x4x256xf32>
    %26 = arith.mulf %0, %25 : vector<2x4x256xf32>
    %27 = vector.shape_cast %23 : vector<4x1xf32> to vector<1x4x1xf32>
    %28 = vector.broadcast %27 : vector<1x4x1xf32> to vector<2x4x256xf32>
    %29 = arith.addf %26, %28 : vector<2x4x256xf32>
    %c0_13 = arith.constant 0 : index
    %c0_14 = arith.constant 0 : index
    %c0_15 = arith.constant 0 : index
    %30 = vector.load %arg3[%c0_13, %c0_14, %c0_15] : memref<2x4x256xf32, #tpu.memory_space<vmem>>, vector<2x4x256xf32>
    tpu.vector_store %arg3[%c0_13, %c0_14, %c0_15], %29 {strides = array<i32>} : memref<2x4x256xf32, #tpu.memory_space<vmem>>, vector<2x4x256xf32>,
    return
  }
}

</mosaic_0001>

<bundles_post_ra>
// kernel: tpu_custom_call.1
= control target key start
LH: loop header
LB: loop body
LE: loop exit
PB: predicated region body
PF: predicated region fallthrough
CT: control target
= control target key end

     0   :  { %8 = vsyncpa [#allocation3], 0  ;;  %s278_s0 = inlined_call_operand.hbm [shape: f32[2,4,256], index: 0, kind: input, shape index: {}]   ;;  %s279_s1 = inlined_call_operand.vmem [shape: f32[4,1], index: 1, kind: input, shape index: {}]   ;;  %s280_s2 = inlined_call_operand.vmem [shape: f32[4,1], index: 2, kind: input, shape index: {}]   ;;  %s281_s3 = inlined_call_operand.hbm [shape: f32[2,4,256], index: 3, kind: output, shape index: {}]  }
   0x1   :  { %9 = vsyncpa [#allocation4], 0  ;;  %s14_s14 = sshll.u32 %s278_s0, 4  ;;  %s210_s15 = smov [#allocation2]   ;;  %s15_s14 = int_to_ptr.hbm [resolvable:$true] %s14_s14 }
   0x2   :  { %s16_s16 = sshll.u32 %s210_s15, 4  ;;  %s211_s17 = smov 128   ;;  %s17_s16 = int_to_ptr.vmem [resolvable:$true] %s16_s16 }
   0x3   :  { %s212_s18 = smov 8  }
   0x4   :  { %22 = dma.hbm_to_vmem [thread:$0]  %s15_s14, 256, %s17_s16, [#allocation3], %s211_s17, %s211_s17, %s212_s18  }
   0x5   :  { %206 = dma.done.wait [#allocation3], 256  }
   0x6   :  { %207 = vsyncadd [#allocation3], 4294967040  ;;  %v242_v0 = vld [vmem:[#allocation2] sm:$0xff]  ;;  %v244_v1 = vld [vmem:[#allocation2 + $0x8] sm:$0xff]  ;;  %vm46_vm0 = vcmask 1043456   ;;  %v213_v30 = vmov 0  }
   0x7   :  { %35 = vst [vmem:[#allocation1] ss:$2 sm:$0xff] %v242_v0  ;;  %v58_v2 = vmul.f32 %v242_v0, %v242_v0  ;;  %v59_v3 = vmul.f32 %v244_v1, %v244_v1  ;;  %154 = vset.pattern.permute.xlu1 %v213_v30  ;;  %155 = vset.pattern.permute.xlu0 %v213_v30  ;;  %v100_v45 = vld [vmem:[%s279_s1] sm:$0xf]  ;;  %v214_v51 = vmov 839922192  }
   0x8   :  { %39 = vst [vmem:[#allocation1 + $0x10] ss:$2 sm:$0xff] %v244_v1  ;;  %v102_v49 = vld [vmem:[%s280_s2] sm:$0xf]  ;;  %v110_v52 = vunpack.c.l.s4 %v214_v51  ;;  %s215_s1 = smov [#allocation5]   ;;  %s135_s25 = sshll.u32 %s281_s3, 4  ;;  %s136_s25 = int_to_ptr.hbm [resolvable:$true] %s135_s25 }
   0x9   :  { %s133_s22 = sshll.u32 %s215_s1, 4  ;;  %s134_s22 = int_to_ptr.vmem [resolvable:$true] %s133_s22 }
   0xa   :  { %v111_v54 = vunpack.c.0.s8 %v110_v52 }
   0xe   :  { %v36_v4 = vld.sshfl [vmem:[#allocation1] sm:$0xff pattern:$0x75316420]  ;;  %v37_v5 = vld.sshfl [vmem:[#allocation1 + $0x8] sm:$0xff pattern:$0x75316420] }
   0xf   :  { %v40_v6 = vld.sshfl [vmem:[#allocation1 + $0x10] sm:$0xff pattern:$0x75316420]  ;;  %v41_v7 = vld.sshfl [vmem:[#allocation1 + $0x18] sm:$0xff pattern:$0x75316420] }
  0x10   :  { %v47_v8 = vsel %vm46_vm0, %v36_v4, 0.0  ;;  %v48_v9 = vsel %vm46_vm0, %v40_v6, 0.0  ;;  %v50_v10 = vsel %vm46_vm0, %v37_v5, 0.0  ;;  %v51_v11 = vsel %vm46_vm0, %v41_v7, 0.0  ;;  %62 = vst [vmem:[#allocation1] ss:$2 sm:$0xff] %v58_v2 }
  0x11   :  { %v49_v12 = vadd.f32 %v48_v9, %v47_v8  ;;  %v52_v13 = vadd.f32 %v51_v11, %v50_v10  ;;  %66 = vst [vmem:[#allocation1 + $0x10] ss:$2 sm:$0xff] %v59_v3 }
  0x13   :  { %v53_v14 = vsel %vm46_vm0, %v49_v12, 0.0  ;;  %v54_v15 = vsel %vm46_vm0, %v52_v13, 0.0 }
  0x14   :  { %v55_v16 = vadd.f32 %v54_v15, %v53_v14 }
  0x16   :  { %56 = vadd.xlane.f32.xlu0 %v55_v16 }
  0x17   :  { %v63_v17 = vld.sshfl [vmem:[#allocation1] sm:$0xff pattern:$0x75316420]  ;;  %v64_v18 = vld.sshfl [vmem:[#allocation1 + $0x8] sm:$0xff pattern:$0x75316420] }
  0x18   :  { %v67_v19 = vld.sshfl [vmem:[#allocation1 + $0x10] sm:$0xff pattern:$0x75316420]  ;;  %v68_v20 = vld.sshfl [vmem:[#allocation1 + $0x18] sm:$0xff pattern:$0x75316420] }
  0x19   :  { %v73_v21 = vsel %vm46_vm0, %v63_v17, 0.0  ;;  %v74_v22 = vsel %vm46_vm0, %v67_v19, 0.0  ;;  %v76_v23 = vsel %vm46_vm0, %v64_v18, 0.0  ;;  %v77_v24 = vsel %vm46_vm0, %v68_v20, 0.0 }
  0x1a   :  { %v75_v25 = vadd.f32 %v74_v22, %v73_v21  ;;  %v78_v26 = vadd.f32 %v77_v24, %v76_v23 }
  0x1c   :  { %v79_v27 = vsel %vm46_vm0, %v75_v25, 0.0  ;;  %v80_v28 = vsel %vm46_vm0, %v78_v26, 0.0 }
  0x1d   :  { %v81_v29 = vadd.f32 %v80_v28, %v79_v27 }
  0x1f   :  { %82 = vadd.xlane.f32.xlu0 %v81_v29 }
  0x89   :  { %v57_v31 = vpop.xlane.xlu0 %56 }
  0x8a   :  { %v84_v32 = vmul.f32 0.001953125, %v57_v31 }
  0x8c   :  { %v86_v34 = vmul.f32 %v84_v32, %v84_v32 }
  0x92   :  { %v83_v33 = vpop.xlane.xlu0 %82 }
  0x93   :  { %v85_v35 = vmul.f32 0.001953125, %v83_v33 }
  0x95   :  { %v87_v36 = vsub.f32 %v85_v35, %v86_v34 }
  0x97   :  { %v88_v37 = vmax.f32 %v87_v36, 0.0 }
  0x99   :  { %v89_v38 = vadd.f32 1e-05, %v88_v37 }
  0x9b   :  { %156 = vrsqrt.f32 %v89_v38  ;;  %vm96_vm2 = vweird.f32 %v89_v38 }
  0xa1   :  { %v157_v39 = vpop.eup %156 }
  0xa2   :  { %v91_v40 = vmul.f32 %v157_v39, %v89_v38  ;;  %vm97_vm1 = vweird.f32 %v157_v39 }
  0xa3   :  { %vm98_vm3 = vmor %vm96_vm2, %vm97_vm1 }
  0xa4   :  { %v92_v41 = vmul.f32 %v157_v39, %v91_v40 }
  0xa6   :  { %v93_v42 = vmul.f32 0.5, %v92_v41 }
  0xa8   :  { %v94_v43 = vsub.f32 1.5, %v93_v42 }
  0xaa   :  { %v95_v44 = vmul.f32 %v157_v39, %v94_v43 }
  0xac   :  { %v99_v46 = vsel %vm98_vm3, %v157_v39, %v95_v44 }
  0xad   :  { %v101_v47 = vmul.f32 %v100_v45, %v99_v46 }
  0xaf   :  { %107 = vperm.xlu1 %154, %v101_v47   ;;  %v103_v48 = vmul.f32 %v101_v47, %v84_v32 }
  0xb1   :  { %v104_v50 = vsub.f32 %v102_v49, %v103_v48 }
  0xb7   :  { %118 = vperm.xlu1 %154, %v104_v50  }
 0x121   :  { %v108_v53 = vpop.permute.xlu1 %107 }
 0x122   :  { %v112_v55 = vperm.slane %v108_v53, %v111_v54 }
 0x124   :  { %v114_v57 = vmul.f32 %v112_v55, %v242_v0  ;;  %v115_v58 = vmul.f32 %v112_v55, %v244_v1 }
 0x129   :  { %v119_v56 = vpop.permute.xlu1 %118 }
 0x12a   :  { %v123_v59 = vperm.slane %v119_v56, %v111_v54 }
 0x12c   :  { %v125_v60 = vadd.f32 %v123_v59, %v114_v57  ;;  %v126_v61 = vadd.f32 %v123_v59, %v115_v58 }
 0x12e   :  { %127 = vst [vmem:[#allocation5] sm:$0xff] %v125_v60 }
 0x12f   :  { %128 = vst [vmem:[#allocation5 + $0x8] sm:$0xff] %v126_v61 }
 0x130   :  { %141 = dma.vmem_to_hbm [thread:$0]  %s134_s22, 256, %s136_s25, [#allocation4], %s211_s17, %s211_s17, %s212_s18  }
 0x131   :  { %208 = dma.done.wait [#allocation4], 256  }
 0x132   :  { %209 = vsyncadd [#allocation4], 4294967040 }
 0x133   :  { %146 = vsyncpa [#allocation3], 1 }
 0x134   :  { %147 = vsyncpa [#allocation4], 1 }

</bundles_post_ra>
